<compile_context>
chip_gen: v7x
topology: tpu7x:2x2x1
jax: 0.10.0
libtpu: 0.0.40
codegen_flags: <defaults>
</compile_context>

<pallas_src>
import jax
import jax.numpy as jnp
from jax.experimental import pallas as pl
from jax.experimental.pallas import tpu as pltpu


def logistic_kernel(x_ref, w_ref, b_ref, o_ref):
    # x_ref: (2, TR, TC) VMEM — dense feature planes (plane 0 = feature 0).
    # w_ref: (2,) SMEM scalars, b_ref: (1,) SMEM scalar.
    # o_ref: (TR, TC) VMEM — dense output plane (unmasked full-vreg stores).
    w0 = w_ref[0]
    w1 = w_ref[1]
    b = b_ref[0]
    z = x_ref[0] * w0 + x_ref[1] * w1 + b            # VPU: 2 vmul + 2 vadd, no MXU
    # sigmoid(z) = 0.5 * tanh(0.5 * z) + 0.5 : single accurate EUP op, the
    # scale/shift ride on the VALU (replaces exp + approx-reciprocal).
    o_ref[...] = (0.5 * jnp.tanh(0.5 * z) + 0.5).astype(o_ref.dtype)


def logistic_regression(x, w, b, *, tile_rows=512, tile_cols=1024):
    """x: (N, 2) f32, w: (2, 1) f32, b: (1, 1) f32 -> (N, 1) f32 = sigmoid(x @ w + b)."""
    N, F = x.shape
    assert F == 2 and w.shape == (F, 1)

    # Lane-dense tile width (multiple of 128), clamped for small N.
    tc = min(tile_cols, max(128, pl.cdiv(N, 128) * 128))
    rows_needed = pl.cdiv(N, tc)
    # Sublane-dense tile height (multiple of 8), clamped so padding stays small.
    tr = min(tile_rows, max(8, pl.cdiv(rows_needed, 8) * 8))
    R = pl.cdiv(rows_needed, tr) * tr
    n_pad = R * tc

    # Feature-major dense planes: xt[f, r, c] = x[r*tc + c, f]; padded slots
    # compute sigmoid(b) and are sliced away below.  Single fused XLA pass.
    xt = jnp.zeros((F, n_pad), x.dtype).at[:, :N].set(x.T).reshape(F, R, tc)
    w_s = w.reshape(F)            # (2,) -> SMEM scalars
    b_s = b.reshape(-1)[:1]       # (1,) -> SMEM scalar

    grid = (R // tr,)
    out = pl.pallas_call(
        logistic_kernel,
        out_shape=jax.ShapeDtypeStruct((R, tc), x.dtype),
        grid=grid,
        in_specs=[
            # Both feature planes of the current row-tile: (2, TR, TC) in VMEM.
            pl.BlockSpec((F, tr, tc), lambda i: (0, i, 0)),
            pl.BlockSpec(memory_space=pltpu.MemorySpace.SMEM),   # w scalars
            pl.BlockSpec(memory_space=pltpu.MemorySpace.SMEM),   # b scalar
        ],
        out_specs=pl.BlockSpec((tr, tc), lambda i: (i, 0)),
        compiler_params=pltpu.CompilerParams(
            dimension_semantics=("parallel",)),                  # v7x megacore split
    )(xt, w_s, b_s)

    # Dense contiguous slab -> cheap reshape + tail slice to the caller's (N, 1).
    return out.reshape(n_pad)[:N].reshape(N, 1)


if __name__ == "__main__":
    key = jax.random.PRNGKey(0)
    kx, kw, kb = jax.random.split(key, 3)

    N, F, OUT = 8, 2, 1  # LogisticRegression: proj = nn.Linear(2, 1)
    x = jax.random.normal(kx, (N, F), dtype=jnp.float32)

    # Deterministic init matching nn.Linear's uniform(-1/sqrt(in), 1/sqrt(in)).
    bound = 1.0 / jnp.sqrt(jnp.float32(F))
    w = jax.random.uniform(kw, (F, OUT), jnp.float32, -bound, bound)
    b = jax.random.uniform(kb, (1, OUT), jnp.float32, -bound, bound)

    y = logistic_regression(x, w, b)
    jax.block_until_ready(y)

    # Reference check in plain JAX (tanh-based sigmoid is accurate -> tight tol).
    y_ref = jax.nn.sigmoid(x @ w + b)
    assert y.shape == (N, OUT)
    assert jnp.allclose(y, y_ref, atol=1e-4, rtol=1e-4), "mismatch vs reference"
    print("KERNEL_OK")
</pallas_src>

<mosaic_0001>
module attributes {stable_mosaic.version = 11 : i64} {
  func.func @logistic_kernel(%arg0: i32, %arg1: memref<2x8x128xf32, #tpu.memory_space<vmem>>, %arg2: memref<2xf32, #tpu.memory_space<smem>>, %arg3: memref<1xf32, #tpu.memory_space<smem>>, %arg4: memref<8x128xf32, #tpu.memory_space<vmem>>) attributes {dimension_semantics = [#tpu.dimension_semantics<parallel>], iteration_bounds = array<i64: 1>, scalar_prefetch = 0 : i64, scratch_operands = 0 : i64, tpu.core_type = #tpu.core_type<tc>, window_params = [{transform_indices = @transform_0, window_bounds = array<i64: 2, 8, 128>}, {transform_indices = @transform_1, window_bounds = array<i64: 2>}, {transform_indices = @transform_2, window_bounds = array<i64: 1>}, {transform_indices = @transform_3, window_bounds = array<i64: 8, 128>}]} {
    %c0 = arith.constant 0 : index
    %0 = memref.load %arg2[%c0] : memref<2xf32, #tpu.memory_space<smem>>
    %c1 = arith.constant 1 : index
    %1 = memref.load %arg2[%c1] : memref<2xf32, #tpu.memory_space<smem>>
    %c0_0 = arith.constant 0 : index
    %2 = memref.load %arg3[%c0_0] : memref<1xf32, #tpu.memory_space<smem>>
    %c0_1 = arith.constant 0 : index
    %c0_2 = arith.constant 0 : index
    %c0_3 = arith.constant 0 : index
    %3 = vector.load %arg1[%c0_1, %c0_2, %c0_3] : memref<2x8x128xf32, #tpu.memory_space<vmem>>, vector<1x8x128xf32>
    %4 = vector.shape_cast %3 : vector<1x8x128xf32> to vector<8x128xf32>
    %5 = vector.broadcast %0 : f32 to vector<8x128xf32>
    %6 = arith.mulf %4, %5 : vector<8x128xf32>
    %c1_4 = arith.constant 1 : index
    %c0_5 = arith.constant 0 : index
    %c0_6 = arith.constant 0 : index
    %7 = vector.load %arg1[%c1_4, %c0_5, %c0_6] : memref<2x8x128xf32, #tpu.memory_space<vmem>>, vector<1x8x128xf32>
    %8 = vector.shape_cast %7 : vector<1x8x128xf32> to vector<8x128xf32>
    %9 = vector.broadcast %1 : f32 to vector<8x128xf32>
    %10 = arith.mulf %8, %9 : vector<8x128xf32>
    %11 = arith.addf %6, %10 : vector<8x128xf32>
    %12 = vector.broadcast %2 : f32 to vector<8x128xf32>
    %13 = arith.addf %11, %12 : vector<8x128xf32>
    %cst = arith.constant 5.000000e-01 : f32
    %14 = vector.broadcast %cst : f32 to vector<8x128xf32>
    %15 = arith.mulf %14, %13 : vector<8x128xf32>
    %16 = math.tanh %15 : vector<8x128xf32>
    %cst_7 = arith.constant 5.000000e-01 : f32
    %17 = vector.broadcast %cst_7 : f32 to vector<8x128xf32>
    %18 = arith.mulf %17, %16 : vector<8x128xf32>
    %cst_8 = arith.constant 5.000000e-01 : f32
    %19 = vector.broadcast %cst_8 : f32 to vector<8x128xf32>
    %20 = arith.addf %18, %19 : vector<8x128xf32>
    %c0_9 = arith.constant 0 : index
    %c0_10 = arith.constant 0 : index
    %21 = vector.load %arg4[%c0_9, %c0_10] : memref<8x128xf32, #tpu.memory_space<vmem>>, vector<8x128xf32>
    tpu.vector_store %arg4[%c0_9, %c0_10], %20 {strides = array<i32>} : memref<8x128xf32, #tpu.memory_space<vmem>>, vector<8x128xf32>,
    return
  }
  func.func @transform_0(%arg0: i32) -> (i32, i32, i32) {
    %c0_i32 = arith.constant 0 : i32
    %c0_i32_0 = arith.constant 0 : i32
    %c0_i32_1 = arith.constant 0 : i32
    return %c0_i32, %arg0, %c0_i32_0 : i32, i32, i32
  }
  func.func @transform_1(%arg0: i32) -> i32 {
    %c0_i32 = arith.constant 0 : i32
    %c0_i32_0 = arith.constant 0 : i32
    return %c0_i32 : i32
  }
  func.func @transform_2(%arg0: i32) -> i32 {
    %c0_i32 = arith.constant 0 : i32
    %c0_i32_0 = arith.constant 0 : i32
    return %c0_i32 : i32
  }
  func.func @transform_3(%arg0: i32) -> (i32, i32) {
    %c0_i32 = arith.constant 0 : i32
    %c0_i32_0 = arith.constant 0 : i32
    return %arg0, %c0_i32 : i32, i32
  }
}

</mosaic_0001>

<bundles_post_ra>
// kernel: tpu_custom_call.1
= control target key start
LH: loop header
LB: loop body
LE: loop exit
PB: predicated region body
PF: predicated region fallthrough
CT: control target
= control target key end

     0   :  { %9 = vsyncpa [#allocation4], 0  ;;  %s202_s0 = inlined_call_operand.hbm [shape: f32[2,8,128], index: 0, kind: input, shape index: {}]   ;;  %s203_s1 = inlined_call_operand.vmem [shape: f32[2], index: 1, kind: input, shape index: {}]   ;;  %s204_s2 = inlined_call_operand.<no memory space> [shape: f32[1], index: 2, kind: input, shape index: {}]   ;;  %s205_s3 = inlined_call_operand.hbm [shape: f32[8,128], index: 3, kind: output, shape index: {}]  }
   0x1   :  { %10 = vsyncpa [#allocation6], 0 }
   0x2   :  { %11 = vsyncpa [#allocation5], 0  ;;  %s147_s12 = smov [#allocation3]   ;;  %s30_s16 = sshll.u32 %s203_s1, 4  ;;  %s31_s16 = int_to_ptr.vmem [resolvable:$true] %s30_s16 }
   0x3   :  { %s17_s13 = sshll.u32 %s147_s12, 4  ;;  %s85_s19 = scalar_lea.hbm %s202_s0, 256  ;;  %s18_s13 = int_to_ptr.vmem [resolvable:$true] %s17_s13 }
   0x4   :  { %p86_p0 = scmp.ne.s32.totalorder %s202_s0, %s85_s19  ;;  %p89_p1 = scmp.lt.u32.totalorder %s85_s19, %s202_s0 }
   0x6   :  { %p91_p2 = pnand %p89_p1, %p86_p0 }
   0x8   :  { %94 = shalt.err (!%p91_p2)
}
   0x9   :  { %s95_s24 = scalar_lea.vmem %s18_s13, 256  ;;  %p100_p4 = scmp.lt.s32.totalorder %s18_s13, %s18_s13 }
   0xa   :  { %p96_p3 = scmp.ne.s32.totalorder %s18_s13, %s95_s24  ;;  %p101_p5 = scmp.lt.s32.totalorder %s95_s24, %s95_s24 }
   0xc   :  { %p102_p6 = por %p101_p5, %p100_p4 }
   0xe   :  { %p103_p7 = pnand %p102_p6, %p96_p3 }
  0x10   :  { %106 = shalt.err (!%p103_p7)
}
  0x11   :  { %s148_s1 = smov 128   ;;  %s149_s25 = smov 8  }
  0x12   :  { %23 = dma.hbm_to_vmem [thread:$0]  %s202_s0, 256, %s18_s13, [#allocation4], %s148_s1, %s148_s1, %s149_s25  }
  0x13   :  { %s107_s28 = scalar_lea.vmem %s31_s16, 16  ;;  %p112_p9 = scmp.lt.s32.totalorder %s31_s16, %s31_s16 }
  0x14   :  { %p108_p8 = scmp.ne.s32.totalorder %s31_s16, %s107_s28  ;;  %p113_p10 = scmp.lt.s32.totalorder %s107_s28, %s107_s28 }
  0x16   :  { %p114_p11 = por %p113_p10, %p112_p9 }
  0x18   :  { %p115_p12 = pnand %p114_p11, %p108_p8 }
  0x1a   :  { %118 = shalt.err (!%p115_p12)
}
  0x1b   :  { %s150_s29 = smov [#allocation7]  }
  0x1c   :  { %33 = dma.vmem_to_smem %s31_s16, 16, %s150_s29, [#allocation6]  }
  0x1d   :  { %141 = dma.done.wait [#allocation4], 256  }
  0x1e   :  { %142 = vsyncadd [#allocation4], 4294967040 }
  0x1f   :  { %143 = dma.done.wait [#allocation6], 16  }
  0x20   :  { %144 = vsyncadd [#allocation6], 4294967280 }
  0x21   :  { %42 = sfence }
  0x22   :  { %s43_s30 = sld [smem:[#allocation7]]  ;;  %s77_s4 = sld [smem:[#allocation7 + $0x1]]  ;;  %v46_v0 = vld [vmem:[#allocation3] sm:$0xff]  ;;  %v50_v1 = vld [vmem:[#allocation3 + $0x8] sm:$0xff]  ;;  %v54_v6 = vstv %s204_s2 }
  0x23   :  { %s151_s6 = smov [#allocation8]  }
  0x24   :  { %s67_s7 = sshll.u32 %s151_s6, 4  ;;  %s68_s7 = int_to_ptr.vmem [resolvable:$true] %s67_s7 }
  0x25   :  { %s119_s8 = scalar_lea.vmem %s68_s7, 128  ;;  %p124_p0 = scmp.lt.s32.totalorder %s68_s7, %s68_s7 }
  0x26   :  { %p120_p13 = scmp.ne.s32.totalorder %s68_s7, %s119_s8  ;;  %p125_p1 = scmp.lt.s32.totalorder %s119_s8, %s119_s8 }
  0x28   :  { %v47_v2 = vstv %s43_s30  ;;  %v51_v3 = vstv %s77_s4  ;;  %p126_p2 = por %p125_p1, %p124_p0 }
  0x29   :  { %v48_v4 = vmul.f32 %v47_v2, %v46_v0  ;;  %v52_v5 = vmul.f32 %v51_v3, %v50_v1 }
  0x2a   :  { %p127_p3 = pnand %p126_p2, %p120_p13 }
  0x2b   :  { %v53_v7 = vadd.f32 %v52_v5, %v48_v4 }
  0x2d   :  { %v55_v8 = vadd.f32 %v54_v6, %v53_v7 }
  0x2f   :  { %v56_v9 = vmul.f32 0.5, %v55_v8 }
  0x31   :  { %83 = vtanh.f32 %v56_v9 }
  0x3b   :  { %v84_v10 = vpop.eup %83 }
  0x3c   :  { %v58_v11 = vmul.f32 0.5, %v84_v10 }
  0x3e   :  { %v59_v12 = vadd.f32 0.5, %v58_v11 }
  0x40   :  { %60 = vst [vmem:[#allocation8] sm:$0xff] %v59_v12 }
  0x41   :  { %130 = shalt.err (!%p127_p3)
}
  0x42   :  { %s131_s10 = scalar_lea.hbm %s205_s3, 128 }
  0x43   :  { %p132_p4 = scmp.ne.s32.totalorder %s205_s3, %s131_s10  ;;  %p135_p5 = scmp.lt.u32.totalorder %s131_s10, %s205_s3 }
  0x45   :  { %p137_p6 = pnand %p135_p5, %p132_p4 }
  0x47   :  { %140 = shalt.err (!%p137_p6)
}
  0x48   :  { %70 = dma.vmem_to_hbm [thread:$0]  %s68_s7, 128, %s205_s3, [#allocation5]  }
  0x49   :  { %145 = dma.done.wait [#allocation5], 128  }
  0x4a   :  { %146 = vsyncadd [#allocation5], 4294967168 }
  0x4b   :  { %74 = vsyncpa [#allocation4], 1 }
  0x4c   :  { %75 = vsyncpa [#allocation5], 1 }
  0x4d   :  { %76 = vsyncpa [#allocation6], 1 }

</bundles_post_ra>
